<compile_context>
chip_gen: v7x
topology: tpu7x:2x2x1
jax: 0.10.0
libtpu: 0.0.40
codegen_flags: <defaults>
</compile_context>

<pallas_src>
import math

import jax
import jax.numpy as jnp
import numpy as np
from jax import lax
from jax.experimental import pallas as pl
from jax.experimental.pallas import tpu as pltpu

# ----------------------- configuration (mirrors __init__ args) ----------------
B = 2              # batch
C_IN = 32          # in_channels
F = 8              # number of frames (temporal sequence length)
H = 8
W = 8
S = H * W          # spatial positions per frame (64)
N = F * S          # lane width of every activation slab (512)
HEADS = 4          # num_attention_heads
DH = 8             # attention_head_dim
D = HEADS * DH     # inner_dim = 32
NUM_LAYERS = 1     # num_layers
L2 = 2 * NUM_LAYERS
NUM_GROUPS = 8     # norm_num_groups
CG = C_IN // NUM_GROUPS
GN_EPS = 1e-6
LN_EPS = 1e-5
FF_MULT = 4        # diffusers FeedForward default mult
FF_INNER = FF_MULT * D           # 128
MAX_LEN = 32       # temporal_position_encoding_max_len
TEMPORAL_PE = True # temporal_position_encoding
CAUSAL = True      # causal_temporal_attention, mask type 'causal'
SCALE = DH ** -0.5
NEG = -1e9         # additive mask value; exp() underflows to 0 exactly like -inf, NaN-safe

assert C_IN == D   # packing below stacks (out, in) weight blocks with a common in-dim

# ---- packed parameter geometry -------------------------------------------------
# wpack rows (bf16, (WROWS, C_IN)): proj_in | per layer [qkv, o]x2 + geglu | proj_out
W_ATTN = 4 * D                          # qkv (3D) + out-proj (D) rows per attention
W_LAYER = 2 * W_ATTN + 2 * FF_INNER     # 512 rows per layer
WBASE = D
W_POUT = D + NUM_LAYERS * W_LAYER
WROWS = W_POUT + C_IN                   # 576

# vpack rows (f32, (VROWS, 1)): column vectors, broadcast over the 512-lane axis
OFF_GN_G = 0
OFF_GN_B = C_IN
OFF_PIN_B = 2 * C_IN
OFF_POUT_B = 2 * C_IN + D
VBASE = 3 * C_IN + D
V_ATTN = 3 * D                          # ln_gamma, ln_beta, out_bias
V_LAYER = 2 * V_ATTN + 3 * D + 2 * FF_INNER   # 544
VROWS = VBASE + NUM_LAYERS * V_LAYER    # 672

PLROWS = 2 * F + D                      # segb (F) | mask (F) | temporal PE (D)


# ============================ fused transformer kernel =========================
def _ln_cols(h, g_col, b_col):
    """LayerNorm over the channel (sublane) axis of a (D, N) slab."""
    mu = jnp.mean(h, axis=0, keepdims=True)
    var = jnp.mean((h - mu) ** 2, axis=0, keepdims=True)
    return (h - mu) * lax.rsqrt(var + LN_EPS) * g_col + b_col


def _fused_kernel(x_ref, wpack_ref, wff_ref, vpack_ref, planes_ref, segr_ref,
                  grp_ref, o_ref):
    wp = wpack_ref[...]               # (WROWS, C_IN) bf16  (out, in) weight pack
    wff = wff_ref[...]                # (L*D, FF_INNER) bf16 feed-forward out weights
    vp = vpack_ref[...]               # (VROWS, 1) f32 column-vector pack
    planes = planes_ref[...]          # (2F + D, N) f32 constant lane planes
    segr = segr_ref[...]              # (N, F) f32: per-frame segment indicator
    grp = grp_ref[...]                # (C, C) f32: group-average matrix (1/(cg*S))

    segb = planes[0:F]                # (F, N) broadcast matrix (segr transposed)
    mask_dn = planes[F:2 * F]         # (F, N) additive mask per frame-shift
    pe_dn = planes[2 * F:2 * F + D]   # (D, N) temporal positional encoding

    def vcol(off, length):            # column vector slice, broadcast over lanes
        return vp[off:off + length]

    for bb in range(x_ref.shape[0]):
        xb = x_ref[bb]                # (C, N) f32, N = F*H*W

        # ---------- InflatedGroupNorm (stats per (group, frame)) ----------
        s1 = jnp.dot(xb, segr, preferred_element_type=jnp.float32)        # (C, F)
        s2 = jnp.dot(xb * xb, segr, preferred_element_type=jnp.float32)   # (C, F)
        mean_cf = jnp.dot(grp, s1, preferred_element_type=jnp.float32)    # group mean
        msq_cf = jnp.dot(grp, s2, preferred_element_type=jnp.float32)     # group E[x^2]
        rstd_cf = lax.rsqrt(msq_cf - mean_cf * mean_cf + GN_EPS)
        gam = vcol(OFF_GN_G, C_IN)
        bet = vcol(OFF_GN_B, C_IN)
        a_cf = gam * rstd_cf
        b_cf = bet - a_cf * mean_cf
        gn = (xb * jnp.dot(a_cf, segb, preferred_element_type=jnp.float32)
              + jnp.dot(b_cf, segb, preferred_element_type=jnp.float32))  # (C, N)

        # ---------- proj_in ----------
        h = jnp.dot(wp[0:D], gn.astype(jnp.bfloat16),
                    preferred_element_type=jnp.float32) + vcol(OFF_PIN_B, D)

        for layer in range(NUM_LAYERS):
            wl = WBASE + layer * W_LAYER
            vl = VBASE + layer * V_LAYER

            # -------- two Temporal_Self attention blocks --------
            for a in range(2):
                wr = wl + a * W_ATTN
                vr = vl + a * V_ATTN
                w_qkv = wp[wr:wr + 3 * D]              # (3D, D) bf16
                w_o = wp[wr + 3 * D:wr + 4 * D]        # (D, D)  bf16
                ln_g = vcol(vr, D)
                ln_b = vcol(vr + D, D)
                o_b = vcol(vr + 2 * D, D)

                nh = _ln_cols(h, ln_g, ln_b)
                if TEMPORAL_PE:
                    nh = nh + pe_dn
                qkv = jnp.dot(w_qkv, nh.astype(jnp.bfloat16),
                              preferred_element_type=jnp.float32)          # (3D, N)
                q = (qkv[0:D] * SCALE).reshape(HEADS, DH, N)
                k = qkv[D:2 * D].reshape(HEADS, DH, N)
                v = qkv[2 * D:3 * D].reshape(HEADS, DH, N)

                # scores: frame-shift d pairs each frame f with its partner frame,
                # contraction over DH=8 is a sublane reduction (no MXU, no concats).
                s_parts = []
                for d in range(F):
                    k_rot = pltpu.roll(k, shift=d * S, axis=2) if d else k
                    s_parts.append(jnp.sum(q * k_rot, axis=1))             # (HEADS, N)
                scores = jnp.stack(s_parts, axis=0) + mask_dn[:, None, :]  # (F, H, N)

                m = jnp.max(scores, axis=0, keepdims=True)
                e = jnp.exp(scores - m)
                den = jnp.sum(e, axis=0, keepdims=True)
                p = e * pl.reciprocal(den, approx=True)                    # (F, H, N)

                ctx = jnp.zeros((HEADS, DH, N), jnp.float32)
                for d in range(F):
                    v_rot = pltpu.roll(v, shift=d * S, axis=2) if d else v
                    ctx = ctx + p[d][:, None, :] * v_rot
                attn = jnp.dot(w_o, ctx.reshape(D, N).astype(jnp.bfloat16),
                               preferred_element_type=jnp.float32) + o_b
                h = attn + h

            # -------- feed-forward (GEGLU) --------
            w_geglu = wp[wl + 2 * W_ATTN:wl + 2 * W_ATTN + 2 * FF_INNER]   # (256, D)
            w_ffo = wff[layer * D:(layer + 1) * D]                         # (D, 128)
            fln_g = vcol(vl + 2 * V_ATTN, D)
            fln_b = vcol(vl + 2 * V_ATTN + D, D)
            ffo_b = vcol(vl + 2 * V_ATTN + 2 * D, D)
            geglu_b = vcol(vl + 2 * V_ATTN + 3 * D, 2 * FF_INNER)          # (256, 1)

            nh = _ln_cols(h, fln_g, fln_b)
            proj = jnp.dot(w_geglu, nh.astype(jnp.bfloat16),
                           preferred_element_type=jnp.float32) + geglu_b   # (256, N)
            # tanh-gelu (EUP); difference vs exact erf gelu is << tolerance
            ffh = proj[0:FF_INNER] * jax.nn.gelu(proj[FF_INNER:], approximate=True)
            h = jnp.dot(w_ffo, ffh.astype(jnp.bfloat16),
                        preferred_element_type=jnp.float32) + ffo_b + h

        # ---------- proj_out + residual, written directly in (C, F*H*W) layout ----
        out = jnp.dot(wp[W_POUT:W_POUT + C_IN], h.astype(jnp.bfloat16),
                      preferred_element_type=jnp.float32) + vcol(OFF_POUT_B, C_IN)
        o_ref[bb] = (out + xb).astype(o_ref.dtype)


# ================================= wrapper =====================================
def _full(shape):
    nd = len(shape)
    return pl.BlockSpec(shape, lambda i, _nd=nd: (0,) * _nd)


def _pick_bb():
    """v7x has 2 TensorCores/chip -> one batch per core; v5e/v6e -> one grid step."""
    try:
        kind = jax.devices()[0].device_kind.lower()
    except Exception:
        kind = ""
    if "v7" in kind or "7x" in kind:
        return 1
    return min(2, B)


BB = _pick_bb()


def temporal_transformer_3d(x, p):
    b, c, f, hh, ww = x.shape
    n = f * hh * ww
    x3 = x.reshape(b, c, n)          # free reshape of NCFHW (row-major)
    out3 = pl.pallas_call(
        _fused_kernel,
        out_shape=jax.ShapeDtypeStruct((b, c, n), jnp.float32),
        grid=(b // BB,),
        in_specs=[
            pl.BlockSpec((BB, c, n), lambda i: (i, 0, 0)),
            _full(p['wpack'].shape),
            _full(p['wff'].shape),
            _full(p['vpack'].shape),
            _full(p['planes'].shape),
            _full(p['segr'].shape),
            _full(p['grp'].shape),
        ],
        out_specs=pl.BlockSpec((BB, c, n), lambda i: (i, 0, 0)),
        compiler_params=pltpu.CompilerParams(dimension_semantics=("parallel",)),
    )(x3, p['wpack'], p['wff'], p['vpack'], p['planes'], p['segr'], p['grp'])
    return out3.reshape(b, c, f, hh, ww)   # free reshape back to NCFHW


# ============================ parameter construction ===========================
def init_params(key):
    ks = jax.random.split(key, 20)

    def nrm(k, shape, s=0.02):
        return jax.random.normal(k, shape, jnp.float32) * s

    p = dict(
        gn_gamma=1.0 + nrm(ks[0], (C_IN,), 0.05),
        gn_beta=nrm(ks[1], (C_IN,), 0.05),
        pin_w=nrm(ks[2], (C_IN, D)),
        pin_b=nrm(ks[3], (D,)),
        aln_w=1.0 + nrm(ks[4], (L2, D), 0.05),
        aln_b=nrm(ks[5], (L2, D)),
        q_w=nrm(ks[6], (L2, D, D)),
        k_w=nrm(ks[7], (L2, D, D)),
        v_w=nrm(ks[8], (L2, D, D)),
        o_w=nrm(ks[9], (L2, D, D)),
        o_b=nrm(ks[10], (L2, D)),
        fln_w=1.0 + nrm(ks[11], (NUM_LAYERS, D), 0.05),
        fln_b=nrm(ks[12], (NUM_LAYERS, D)),
        g_w=nrm(ks[13], (NUM_LAYERS, D, 2 * FF_INNER)),
        g_b=nrm(ks[14], (NUM_LAYERS, 2 * FF_INNER)),
        fo_w=nrm(ks[15], (NUM_LAYERS, FF_INNER, D)),
        fo_b=nrm(ks[16], (NUM_LAYERS, D)),
        pout_w=nrm(ks[17], (D, C_IN)),
        pout_b=nrm(ks[18], (C_IN,)),
    )
    # Kernel feeds the MXU in bf16: round the weight matrices once so the pure JAX
    # reference uses exactly the same (bf16-representable) values.
    for name in ('pin_w', 'q_w', 'k_w', 'v_w', 'o_w', 'g_w', 'fo_w', 'pout_w'):
        p[name] = p[name].astype(jnp.bfloat16).astype(jnp.float32)

    # PositionalEncoding buffer (sin/cos), truncated to F frames.
    position = jnp.arange(MAX_LEN, dtype=jnp.float32)[:, None]
    div_term = jnp.exp(jnp.arange(0, D, 2, dtype=jnp.float32) * (-math.log(10000.0) / D))
    pe = jnp.zeros((MAX_LEN, D), jnp.float32)
    pe = pe.at[:, 0::2].set(jnp.sin(position * div_term))
    pe = pe.at[:, 1::2].set(jnp.cos(position * div_term))
    p['pe'] = pe[:F] if TEMPORAL_PE else jnp.zeros((F, D), jnp.float32)

    # get_causal_temporal_attention_mask, type 'causal' (additive: 0 / big-negative).
    if CAUSAL:
        tri = jnp.tril(jnp.ones((F, F), jnp.float32))
        p['mask'] = jnp.where(tri == 0, NEG, 0.0).astype(jnp.float32)
    else:
        p['mask'] = jnp.zeros((F, F), jnp.float32)
    return p


def _roll_matches_numpy():
    """One-off probe: does pltpu.roll follow np.roll semantics (out[i] = in[i-shift])?"""
    def kernel(x_ref, o_ref):
        o_ref[...] = pltpu.roll(x_ref[...], shift=1, axis=1)
    x = jnp.arange(8 * 128, dtype=jnp.float32).reshape(8, 128)
    out = pl.pallas_call(kernel, out_shape=jax.ShapeDtypeStruct((8, 128), jnp.float32))(x)
    return bool(np.asarray(out)[0, 1] == np.asarray(x)[0, 0])


def pack_params(p, roll_like_np=None):
    """Pack the many tiny parameter arrays into a few lane/sublane-aligned inputs."""
    if roll_like_np is None:
        roll_like_np = _roll_matches_numpy()

    # ---- weight pack: (out, in) rows, 32 columns, sublane-aligned row slices ----
    rows = [p['pin_w'].T]
    for layer in range(NUM_LAYERS):
        for a in range(2):
            idx = 2 * layer + a
            rows += [p['q_w'][idx].T, p['k_w'][idx].T, p['v_w'][idx].T, p['o_w'][idx].T]
        rows += [p['g_w'][layer].T]
    rows += [p['pout_w'].T]
    wpack = jnp.concatenate(rows, axis=0).astype(jnp.bfloat16)
    assert wpack.shape == (WROWS, C_IN)

    wff = jnp.concatenate([p['fo_w'][l].T for l in range(NUM_LAYERS)],
                          axis=0).astype(jnp.bfloat16)            # (L*D, FF_INNER)

    # ---- vector pack: every per-channel vector as a (len, 1) column ----
    vrows = [p['gn_gamma'], p['gn_beta'], p['pin_b'], p['pout_b']]
    for layer in range(NUM_LAYERS):
        for a in range(2):
            idx = 2 * layer + a
            vrows += [p['aln_w'][idx], p['aln_b'][idx], p['o_b'][idx]]
        vrows += [p['fln_w'][layer], p['fln_b'][layer], p['fo_b'][layer], p['g_b'][layer]]
    vpack = jnp.concatenate(vrows, axis=0).reshape(-1, 1).astype(jnp.float32)
    assert vpack.shape == (VROWS, 1)

    # ---- lane-plane constants: frame-segment matrices, shifted mask, expanded PE ----
    f_of_n = np.arange(N) // S
    segb = (np.arange(F)[:, None] == f_of_n[None, :]).astype(np.float32)   # (F, N)
    segr = segb.T.copy()                                                   # (N, F)
    mask_np = np.asarray(p['mask'], np.float32)
    mask_dn = np.zeros((F, N), np.float32)
    for d in range(F):
        g = (f_of_n - d) % F if roll_like_np else (f_of_n + d) % F
        mask_dn[d, :] = mask_np[f_of_n, g]
    pe_dn = np.repeat(np.asarray(p['pe'], np.float32).T, S, axis=1)        # (D, N)
    planes = jnp.asarray(np.concatenate([segb, mask_dn, pe_dn], axis=0), jnp.float32)
    assert planes.shape == (PLROWS, N)

    cidx = np.arange(C_IN) // CG
    grp = (cidx[:, None] == cidx[None, :]).astype(np.float32) / (CG * S)   # (C, C)

    return dict(wpack=wpack, wff=wff, vpack=vpack, planes=planes,
                segr=jnp.asarray(segr), grp=jnp.asarray(grp))


# ============================ pure-JAX reference ===============================
def reference(x, p):
    b, c, f, hh, ww = x.shape
    cg = c // NUM_GROUPS
    xg = x.transpose(0, 2, 1, 3, 4).reshape(b * f, NUM_GROUPS, cg, hh * ww)
    mean = xg.mean(axis=(2, 3), keepdims=True)
    var = ((xg - mean) ** 2).mean(axis=(2, 3), keepdims=True)
    xn = (xg - mean) / jnp.sqrt(var + GN_EPS)
    gamma = p['gn_gamma'].reshape(NUM_GROUPS, cg)[None, :, :, None]
    beta = p['gn_beta'].reshape(NUM_GROUPS, cg)[None, :, :, None]
    gn = (xn * gamma + beta).reshape(b, f, c, hh, ww)
    tok = gn.transpose(0, 3, 4, 1, 2).reshape(b * hh * ww, f, c)

    hid = tok @ p['pin_w'] + p['pin_b']

    def ln(xv, g, bb2):
        mu = xv.mean(-1, keepdims=True)
        v = ((xv - mu) ** 2).mean(-1, keepdims=True)
        return (xv - mu) / jnp.sqrt(v + LN_EPS) * g + bb2

    mask = p['mask']
    for layer in range(NUM_LAYERS):
        for a in range(2):
            idx = layer * 2 + a
            nh = ln(hid, p['aln_w'][idx], p['aln_b'][idx])
            if TEMPORAL_PE:
                nh = nh + p['pe'][None]
            q = nh @ p['q_w'][idx]
            k = nh @ p['k_w'][idx]
            v = nh @ p['v_w'][idx]
            qh = q.reshape(-1, f, HEADS, DH).transpose(0, 2, 1, 3)
            kh = k.reshape(-1, f, HEADS, DH).transpose(0, 2, 1, 3)
            vh = v.reshape(-1, f, HEADS, DH).transpose(0, 2, 1, 3)
            s = jnp.einsum('nhfe,nhge->nhfg', qh, kh) * SCALE + mask[None, None]
            pr = jax.nn.softmax(s, axis=-1)
            ctx = jnp.einsum('nhfg,nhge->nhfe', pr, vh).transpose(0, 2, 1, 3).reshape(-1, f, D)
            hid = ctx @ p['o_w'][idx] + p['o_b'][idx] + hid
        nh = ln(hid, p['fln_w'][layer], p['fln_b'][layer])
        pr = nh @ p['g_w'][layer] + p['g_b'][layer]
        val, gate = pr[..., :FF_INNER], pr[..., FF_INNER:]
        ffh = val * jax.nn.gelu(gate, approximate=False)
        hid = ffh @ p['fo_w'][layer] + p['fo_b'][layer] + hid

    out = hid @ p['pout_w'] + p['pout_b']
    out = out.reshape(b, hh, ww, f, c).transpose(0, 4, 3, 1, 2)
    return out + x


# ==================================== main =====================================
if __name__ == "__main__":
    key = jax.random.PRNGKey(0)
    kx, kp = jax.random.split(key)
    x = jax.random.normal(kx, (B, C_IN, F, H, W), jnp.float32)
    raw = init_params(kp)
    kparams = pack_params(raw)

    fwd = jax.jit(temporal_transformer_3d)
    out = fwd(x, kparams)
    jax.block_until_ready(out)

    ref = reference(x, raw)
    np.testing.assert_allclose(np.asarray(out), np.asarray(ref), rtol=2e-2, atol=2e-2)

    # TODO(synk): dropout layers (p=0.0) are identities in eval mode and are omitted.
    print("KERNEL_OK")
</pallas_src>

<mosaic_0001>
module attributes {stable_mosaic.version = 11 : i64} {
  func.func @kernel(%arg0: memref<8x128xf32, #tpu.memory_space<vmem>>, %arg1: memref<8x128xf32, #tpu.memory_space<vmem>>) attributes {dimension_semantics = [], scalar_prefetch = 0 : i64, scratch_operands = 0 : i64, tpu.core_type = #tpu.core_type<tc>} {
    %c0 = arith.constant 0 : index
    %c0_0 = arith.constant 0 : index
    %0 = vector.load %arg0[%c0, %c0_0] : memref<8x128xf32, #tpu.memory_space<vmem>>, vector<8x128xf32>
    %c1_i32 = arith.constant 1 : i32
    %1 = tpu.dynamic_rotate %0 by %c1_i32 dim 1 : vector<8x128xf32>, i32 -> vector<8x128xf32>
    %c0_1 = arith.constant 0 : index
    %c0_2 = arith.constant 0 : index
    %2 = vector.load %arg1[%c0_1, %c0_2] : memref<8x128xf32, #tpu.memory_space<vmem>>, vector<8x128xf32>
    tpu.vector_store %arg1[%c0_1, %c0_2], %1 {strides = array<i32>} : memref<8x128xf32, #tpu.memory_space<vmem>>, vector<8x128xf32>,
    return
  }
}

</mosaic_0001>

<bundles_post_ra>
// kernel: tpu_custom_call.1
= control target key start
LH: loop header
LB: loop body
LE: loop exit
PB: predicated region body
PF: predicated region fallthrough
CT: control target
= control target key end

     0   :  { %6 = vsyncpa [#allocation3], 0  ;;  %s128_s0 = inlined_call_operand.hbm [shape: f32[8,128], index: 0, kind: input, shape index: {}]   ;;  %s129_s1 = inlined_call_operand.hbm [shape: f32[8,128], index: 1, kind: output, shape index: {}]  }
   0x1   :  { %7 = vsyncpa [#allocation4], 0  ;;  %s91_s6 = smov [#allocation2]   ;;  %s43_s10 = scalar_lea.hbm %s128_s0, 128 }
   0x2   :  { %s14_s7 = sshll.u32 %s91_s6, 4  ;;  %p44_p0 = scmp.ne.s32.totalorder %s128_s0, %s43_s10  ;;  %s15_s7 = int_to_ptr.vmem [resolvable:$true] %s14_s7 }
   0x3   :  { %p47_p1 = scmp.lt.u32.totalorder %s43_s10, %s128_s0 }
   0x5   :  { %p49_p2 = pnand %p47_p1, %p44_p0 }
   0x7   :  { %52 = shalt.err (!%p49_p2)
}
   0x8   :  { %s53_s15 = scalar_lea.vmem %s15_s7, 128  ;;  %p58_p4 = scmp.lt.s32.totalorder %s15_s7, %s15_s7 }
   0x9   :  { %p54_p3 = scmp.ne.s32.totalorder %s15_s7, %s53_s15  ;;  %p59_p5 = scmp.lt.s32.totalorder %s53_s15, %s53_s15 }
   0xb   :  { %p60_p6 = por %p59_p5, %p58_p4 }
   0xd   :  { %p61_p7 = pnand %p60_p6, %p54_p3 }
   0xf   :  { %64 = shalt.err (!%p61_p7)
}
  0x10   :  { %17 = dma.hbm_to_vmem [thread:$0]  %s128_s0, 128, %s15_s7, [#allocation3]  }
  0x11   :  { %87 = dma.done.wait [#allocation3], 128  }
  0x12   :  { %88 = vsyncadd [#allocation3], 4294967168  ;;  %v21_v0 = vld [vmem:[#allocation2] sm:$0xff]  ;;  %s92_s18 = smov 1   ;;  %s93_s19 = smov [#allocation5]  }
  0x13   :  { %22 = vrot.lane.b32.xlu0 %v21_v0, %s92_s18  ;;  %s31_s20 = sshll.u32 %s93_s19, 4  ;;  %s32_s20 = int_to_ptr.vmem [resolvable:$true] %s31_s20 }
  0x14   :  { %s65_s21 = scalar_lea.vmem %s32_s20, 128  ;;  %p70_p9 = scmp.lt.s32.totalorder %s32_s20, %s32_s20 }
  0x15   :  { %p66_p8 = scmp.ne.s32.totalorder %s32_s20, %s65_s21  ;;  %p71_p10 = scmp.lt.s32.totalorder %s65_s21, %s65_s21 }
  0x17   :  { %p72_p11 = por %p71_p10, %p70_p9 }
  0x19   :  { %p73_p12 = pnand %p72_p11, %p66_p8 }
  0x85   :  { %v23_v1 = vpop.permute.xlu0 %22 }
  0x86   :  { %24 = vst [vmem:[#allocation5] sm:$0xff] %v23_v1 }
  0x87   :  { %76 = shalt.err (!%p73_p12)
}
  0x88   :  { %s77_s0 = scalar_lea.hbm %s129_s1, 128 }
  0x89   :  { %p78_p13 = scmp.ne.s32.totalorder %s129_s1, %s77_s0  ;;  %p81_p0 = scmp.lt.u32.totalorder %s77_s0, %s129_s1 }
  0x8b   :  { %p83_p1 = pnand %p81_p0, %p78_p13 }
  0x8d   :  { %86 = shalt.err (!%p83_p1)
}
  0x8e   :  { %34 = dma.vmem_to_hbm [thread:$0]  %s32_s20, 128, %s129_s1, [#allocation4]  }
  0x8f   :  { %89 = dma.done.wait [#allocation4], 128  }
  0x90   :  { %90 = vsyncadd [#allocation4], 4294967168 }
  0x91   :  { %38 = vsyncpa [#allocation3], 1 }
  0x92   :  { %39 = vsyncpa [#allocation4], 1 }

</bundles_post_ra>
